<compile_context>
chip_gen: v7x
topology: tpu7x:2x2x1
jax: 0.10.0
libtpu: 0.0.40
codegen_flags: <defaults>
</compile_context>

<pallas_src>
import functools

import jax
import jax.numpy as jnp
from jax.experimental import pallas as pl
from jax.experimental.pallas import tpu as pltpu

HIDLAY = 7
WIDTH = 20
IN_FEATURES = 10
OUT_FEATURES = 1


def _round_up(x, m):
    return ((x + m - 1) // m) * m


def mlp_kernel(x_ref, w0_ref, b0_ref, wh_ref, bh_ref, wf_ref, bf_ref, o_ref,
               *, compute_dtype):
    # x_ref: (IN_FEATURES, TB)  — batch on lanes.
    # Initial linear layer (no activation, per the Sequential construction).
    h = jnp.dot(w0_ref[...], x_ref[...],
                preferred_element_type=jnp.float32) + b0_ref[...]
    # 7 hidden layers (statically unrolled): Linear(width, width) + ReLU.
    # Biases are stored as (HIDLAY, WIDTH, 1) so bh_ref[i] is already 2-D:
    # the add is a straight VPU broadcast-add, no per-iteration re-rank.
    for i in range(HIDLAY):
        h = jnp.dot(wh_ref[i], h.astype(compute_dtype),
                    preferred_element_type=jnp.float32) + bh_ref[i]
        h = jnp.maximum(h, 0.0)
    # Final Linear(width, 1): (1, TB), lane-dense store.
    o_ref[...] = (jnp.dot(wf_ref[...], h.astype(compute_dtype),
                          preferred_element_type=jnp.float32)
                  + bf_ref[...]).astype(o_ref.dtype)


def mlp_forward(x, params, *, batch_tile=1024, compute_dtype=jnp.float32):
    """Forward pass of the PyTorch NeuralNetwork via a Pallas TPU kernel.

    x: (B, ...) with trailing dims flattening to IN_FEATURES (nn.Flatten).
    batch_tile: rows per grid step (rounded to a multiple of 128). For large
      serving/training batches use 512-2048; sized conservatively so tiles fit
      v7x's smaller 64 MiB VMEM as well as v5e/v6e.
    compute_dtype: jnp.float32 (safe everywhere) or jnp.bfloat16 (recommended
      on v6e/v7x; accumulation stays f32, bias-add/ReLU stay f32).
    """
    w0, b0, wh, bh, wf, bf = params
    B = x.shape[0]
    x2 = x.reshape(B, IN_FEATURES)                 # nn.Flatten

    # Layout plumbing in the wrapper: put the batch on the lane axis.
    xt = x2.T.astype(compute_dtype)                # (IN_FEATURES, B)

    # Batch tiling: TB | B_pad and 128 | TB (ragged batches are zero-padded).
    tb = max(128, _round_up(min(batch_tile, B), 128))
    b_pad = _round_up(B, tb)
    if b_pad != B:
        xt = jnp.pad(xt, ((0, 0), (0, b_pad - B)))
    num_tiles = b_pad // tb

    w0c = w0.astype(compute_dtype)
    whc = wh.astype(compute_dtype)
    wfc = wf.astype(compute_dtype)

    kernel = functools.partial(mlp_kernel, compute_dtype=compute_dtype)

    out_t = pl.pallas_call(
        kernel,
        out_shape=jax.ShapeDtypeStruct((OUT_FEATURES, b_pad), jnp.float32),
        grid=(num_tiles,),
        in_specs=[
            # Batch-tiled input: new block each grid step (double-buffered DMA).
            pl.BlockSpec((IN_FEATURES, tb), lambda i: (0, i)),
            # Parameters: constant block index => stay VMEM-resident, no re-DMA.
            pl.BlockSpec((WIDTH, IN_FEATURES), lambda i: (0, 0)),        # w0
            pl.BlockSpec((WIDTH, 1), lambda i: (0, 0)),                  # b0
            pl.BlockSpec((HIDLAY, WIDTH, WIDTH), lambda i: (0, 0, 0)),   # wh
            pl.BlockSpec((HIDLAY, WIDTH, 1), lambda i: (0, 0, 0)),       # bh
            pl.BlockSpec((OUT_FEATURES, WIDTH), lambda i: (0, 0)),       # wf
            pl.BlockSpec((OUT_FEATURES, 1), lambda i: (0, 0)),           # bf
        ],
        out_specs=pl.BlockSpec((OUT_FEATURES, tb), lambda i: (0, i)),
        compiler_params=pltpu.CompilerParams(
            # Independent batch tiles: lets v7x shard the grid across its 2 TCs.
            dimension_semantics=("parallel",),
        ),
    )(xt, w0c, b0, whc, bh, wfc, bf)

    # Un-pad and return PyTorch-shaped logits (B, 1).
    return out_t[:, :B].T


def init_params(key):
    # Deterministic synthetic init (uniform, roughly torch's fan-in scale),
    # stored in PyTorch nn.Linear layout: weight (out_features, in_features).
    ks = jax.random.split(key, 6)

    def uinit(k, shape, fan_in):
        bound = 1.0 / jnp.sqrt(float(fan_in))
        return jax.random.uniform(k, shape, jnp.float32, -bound, bound)

    w0 = uinit(ks[0], (WIDTH, IN_FEATURES), IN_FEATURES)
    b0 = uinit(ks[1], (WIDTH, 1), IN_FEATURES)
    wh = uinit(ks[2], (HIDLAY, WIDTH, WIDTH), WIDTH)
    bh = uinit(ks[3], (HIDLAY, WIDTH, 1), WIDTH)
    wf = uinit(ks[4], (OUT_FEATURES, WIDTH), WIDTH)
    bf = uinit(ks[5], (OUT_FEATURES, 1), WIDTH)
    return (w0, b0, wh, bh, wf, bf)


def reference_forward(x, params):
    # Pure-JAX (row-major) reference for sanity checking.
    w0, b0, wh, bh, wf, bf = params
    h = x.reshape(x.shape[0], IN_FEATURES) @ w0.T + b0[:, 0]
    for i in range(HIDLAY):
        h = jnp.maximum(h @ wh[i].T + bh[i, :, 0], 0.0)
    return h @ wf.T + bf[:, 0]


if __name__ == "__main__":
    key = jax.random.PRNGKey(0)
    pkey, xkey1, xkey2 = jax.random.split(key, 3)
    params = init_params(pkey)

    # Small input consistent with the module: (B, 2, 5) --Flatten--> (B, 10).
    x_small = jax.random.normal(xkey1, (8, 2, 5), jnp.float32)
    out_small = jax.block_until_ready(mlp_forward(x_small, params))
    ref_small = reference_forward(x_small, params)
    assert out_small.shape == (8, OUT_FEATURES)
    assert jnp.allclose(out_small, ref_small, atol=1e-4, rtol=1e-4), \
        "f32 small-batch mismatch vs reference"

    # Larger, ragged batch exercising the multi-tile grid + padding path.
    x_big = jax.random.normal(xkey2, (1000, IN_FEATURES), jnp.float32)
    out_big = jax.block_until_ready(mlp_forward(x_big, params, batch_tile=256))
    ref_big = reference_forward(x_big, params)
    assert out_big.shape == (1000, OUT_FEATURES)
    assert jnp.allclose(out_big, ref_big, atol=1e-4, rtol=1e-4), \
        "f32 tiled-batch mismatch vs reference"

    # bf16 weights/activations with f32 accumulation (v6e/v7x fast path).
    out_bf16 = jax.block_until_ready(
        mlp_forward(x_big, params, batch_tile=256, compute_dtype=jnp.bfloat16))
    assert out_bf16.shape == (1000, OUT_FEATURES)
    assert jnp.allclose(out_bf16, ref_big, atol=0.15, rtol=0.1), \
        "bf16 tiled-batch mismatch vs reference"

    print("KERNEL_OK")
</pallas_src>

<mosaic_0001>
module attributes {stable_mosaic.version = 11 : i64} {
  func.func @mlp_kernel(%arg0: i32, %arg1: memref<10x128xf32, #tpu.memory_space<vmem>>, %arg2: memref<20x10xf32, #tpu.memory_space<vmem>>, %arg3: memref<20x1xf32, #tpu.memory_space<vmem>>, %arg4: memref<7x20x20xf32, #tpu.memory_space<vmem>>, %arg5: memref<7x20x1xf32, #tpu.memory_space<vmem>>, %arg6: memref<1x20xf32, #tpu.memory_space<vmem>>, %arg7: memref<1x1xf32, #tpu.memory_space<vmem>>, %arg8: memref<1x128xf32, #tpu.memory_space<vmem>>) attributes {dimension_semantics = [#tpu.dimension_semantics<parallel>], iteration_bounds = array<i64: 1>, scalar_prefetch = 0 : i64, scratch_operands = 0 : i64, tpu.core_type = #tpu.core_type<tc>, window_params = [{transform_indices = @transform_0, window_bounds = array<i64: 10, 128>}, {pipeline_mode = #tpu.pipeline_mode<synchronous>, transform_indices = @transform_1, window_bounds = array<i64: 20, 10>}, {pipeline_mode = #tpu.pipeline_mode<synchronous>, transform_indices = @transform_2, window_bounds = array<i64: 20, 1>}, {pipeline_mode = #tpu.pipeline_mode<synchronous>, transform_indices = @transform_3, window_bounds = array<i64: 7, 20, 20>}, {pipeline_mode = #tpu.pipeline_mode<synchronous>, transform_indices = @transform_4, window_bounds = array<i64: 7, 20, 1>}, {pipeline_mode = #tpu.pipeline_mode<synchronous>, transform_indices = @transform_5, window_bounds = array<i64: 1, 20>}, {pipeline_mode = #tpu.pipeline_mode<synchronous>, transform_indices = @transform_6, window_bounds = array<i64: 1, 1>}, {transform_indices = @transform_7, window_bounds = array<i64: 1, 128>}]} {
    %c0 = arith.constant 0 : index
    %c0_0 = arith.constant 0 : index
    %0 = vector.load %arg2[%c0, %c0_0] : memref<20x10xf32, #tpu.memory_space<vmem>>, vector<20x10xf32>
    %c0_1 = arith.constant 0 : index
    %c0_2 = arith.constant 0 : index
    %1 = vector.load %arg1[%c0_1, %c0_2] : memref<10x128xf32, #tpu.memory_space<vmem>>, vector<10x128xf32>
    %cst = arith.constant dense<0.000000e+00> : vector<20x128xf32>
    %2 = tpu.matmul %0, %1, %cst {dimension_numbers = #tpu.dot_dimension_numbers<[1], [0], [0], [1], [0, 0, 1, 1], [], []>} : vector<20x10xf32>, vector<10x128xf32>, vector<20x128xf32> -> vector<20x128xf32>
    %c0_3 = arith.constant 0 : index
    %c0_4 = arith.constant 0 : index
    %3 = vector.load %arg3[%c0_3, %c0_4] : memref<20x1xf32, #tpu.memory_space<vmem>>, vector<20x1xf32>
    %4 = vector.broadcast %3 : vector<20x1xf32> to vector<20x128xf32>
    %5 = arith.addf %2, %4 : vector<20x128xf32>
    %c0_5 = arith.constant 0 : index
    %c0_6 = arith.constant 0 : index
    %c0_7 = arith.constant 0 : index
    %6 = vector.load %arg4[%c0_5, %c0_6, %c0_7] : memref<7x20x20xf32, #tpu.memory_space<vmem>>, vector<1x20x20xf32>
    %7 = vector.shape_cast %6 : vector<1x20x20xf32> to vector<20x20xf32>
    %cst_8 = arith.constant dense<0.000000e+00> : vector<20x128xf32>
    %8 = tpu.matmul %7, %5, %cst_8 {dimension_numbers = #tpu.dot_dimension_numbers<[1], [0], [0], [1], [0, 0, 1, 1], [], []>} : vector<20x20xf32>, vector<20x128xf32>, vector<20x128xf32> -> vector<20x128xf32>
    %c0_9 = arith.constant 0 : index
    %c0_10 = arith.constant 0 : index
    %c0_11 = arith.constant 0 : index
    %9 = vector.load %arg5[%c0_9, %c0_10, %c0_11] : memref<7x20x1xf32, #tpu.memory_space<vmem>>, vector<1x20x1xf32>
    %10 = vector.shape_cast %9 : vector<1x20x1xf32> to vector<20x1xf32>
    %11 = vector.broadcast %10 : vector<20x1xf32> to vector<20x128xf32>
    %12 = arith.addf %8, %11 : vector<20x128xf32>
    %cst_12 = arith.constant 0.000000e+00 : f32
    %13 = vector.broadcast %cst_12 : f32 to vector<20x128xf32>
    %14 = arith.maximumf %12, %13 : vector<20x128xf32>
    %c1 = arith.constant 1 : index
    %c0_13 = arith.constant 0 : index
    %c0_14 = arith.constant 0 : index
    %15 = vector.load %arg4[%c1, %c0_13, %c0_14] : memref<7x20x20xf32, #tpu.memory_space<vmem>>, vector<1x20x20xf32>
    %16 = vector.shape_cast %15 : vector<1x20x20xf32> to vector<20x20xf32>
    %cst_15 = arith.constant dense<0.000000e+00> : vector<20x128xf32>
    %17 = tpu.matmul %16, %14, %cst_15 {dimension_numbers = #tpu.dot_dimension_numbers<[1], [0], [0], [1], [0, 0, 1, 1], [], []>} : vector<20x20xf32>, vector<20x128xf32>, vector<20x128xf32> -> vector<20x128xf32>
    %c1_16 = arith.constant 1 : index
    %c0_17 = arith.constant 0 : index
    %c0_18 = arith.constant 0 : index
    %18 = vector.load %arg5[%c1_16, %c0_17, %c0_18] : memref<7x20x1xf32, #tpu.memory_space<vmem>>, vector<1x20x1xf32>
    %19 = vector.shape_cast %18 : vector<1x20x1xf32> to vector<20x1xf32>
    %20 = vector.broadcast %19 : vector<20x1xf32> to vector<20x128xf32>
    %21 = arith.addf %17, %20 : vector<20x128xf32>
    %cst_19 = arith.constant 0.000000e+00 : f32
    %22 = vector.broadcast %cst_19 : f32 to vector<20x128xf32>
    %23 = arith.maximumf %21, %22 : vector<20x128xf32>
    %c2 = arith.constant 2 : index
    %c0_20 = arith.constant 0 : index
    %c0_21 = arith.constant 0 : index
    %24 = vector.load %arg4[%c2, %c0_20, %c0_21] : memref<7x20x20xf32, #tpu.memory_space<vmem>>, vector<1x20x20xf32>
    %25 = vector.shape_cast %24 : vector<1x20x20xf32> to vector<20x20xf32>
    %cst_22 = arith.constant dense<0.000000e+00> : vector<20x128xf32>
    %26 = tpu.matmul %25, %23, %cst_22 {dimension_numbers = #tpu.dot_dimension_numbers<[1], [0], [0], [1], [0, 0, 1, 1], [], []>} : vector<20x20xf32>, vector<20x128xf32>, vector<20x128xf32> -> vector<20x128xf32>
    %c2_23 = arith.constant 2 : index
    %c0_24 = arith.constant 0 : index
    %c0_25 = arith.constant 0 : index
    %27 = vector.load %arg5[%c2_23, %c0_24, %c0_25] : memref<7x20x1xf32, #tpu.memory_space<vmem>>, vector<1x20x1xf32>
    %28 = vector.shape_cast %27 : vector<1x20x1xf32> to vector<20x1xf32>
    %29 = vector.broadcast %28 : vector<20x1xf32> to vector<20x128xf32>
    %30 = arith.addf %26, %29 : vector<20x128xf32>
    %cst_26 = arith.constant 0.000000e+00 : f32
    %31 = vector.broadcast %cst_26 : f32 to vector<20x128xf32>
    %32 = arith.maximumf %30, %31 : vector<20x128xf32>
    %c3 = arith.constant 3 : index
    %c0_27 = arith.constant 0 : index
    %c0_28 = arith.constant 0 : index
    %33 = vector.load %arg4[%c3, %c0_27, %c0_28] : memref<7x20x20xf32, #tpu.memory_space<vmem>>, vector<1x20x20xf32>
    %34 = vector.shape_cast %33 : vector<1x20x20xf32> to vector<20x20xf32>
    %cst_29 = arith.constant dense<0.000000e+00> : vector<20x128xf32>
    %35 = tpu.matmul %34, %32, %cst_29 {dimension_numbers = #tpu.dot_dimension_numbers<[1], [0], [0], [1], [0, 0, 1, 1], [], []>} : vector<20x20xf32>, vector<20x128xf32>, vector<20x128xf32> -> vector<20x128xf32>
    %c3_30 = arith.constant 3 : index
    %c0_31 = arith.constant 0 : index
    %c0_32 = arith.constant 0 : index
    %36 = vector.load %arg5[%c3_30, %c0_31, %c0_32] : memref<7x20x1xf32, #tpu.memory_space<vmem>>, vector<1x20x1xf32>
    %37 = vector.shape_cast %36 : vector<1x20x1xf32> to vector<20x1xf32>
    %38 = vector.broadcast %37 : vector<20x1xf32> to vector<20x128xf32>
    %39 = arith.addf %35, %38 : vector<20x128xf32>
    %cst_33 = arith.constant 0.000000e+00 : f32
    %40 = vector.broadcast %cst_33 : f32 to vector<20x128xf32>
    %41 = arith.maximumf %39, %40 : vector<20x128xf32>
    %c4 = arith.constant 4 : index
    %c0_34 = arith.constant 0 : index
    %c0_35 = arith.constant 0 : index
    %42 = vector.load %arg4[%c4, %c0_34, %c0_35] : memref<7x20x20xf32, #tpu.memory_space<vmem>>, vector<1x20x20xf32>
    %43 = vector.shape_cast %42 : vector<1x20x20xf32> to vector<20x20xf32>
    %cst_36 = arith.constant dense<0.000000e+00> : vector<20x128xf32>
    %44 = tpu.matmul %43, %41, %cst_36 {dimension_numbers = #tpu.dot_dimension_numbers<[1], [0], [0], [1], [0, 0, 1, 1], [], []>} : vector<20x20xf32>, vector<20x128xf32>, vector<20x128xf32> -> vector<20x128xf32>
    %c4_37 = arith.constant 4 : index
    %c0_38 = arith.constant 0 : index
    %c0_39 = arith.constant 0 : index
    %45 = vector.load %arg5[%c4_37, %c0_38, %c0_39] : memref<7x20x1xf32, #tpu.memory_space<vmem>>, vector<1x20x1xf32>
    %46 = vector.shape_cast %45 : vector<1x20x1xf32> to vector<20x1xf32>
    %47 = vector.broadcast %46 : vector<20x1xf32> to vector<20x128xf32>
    %48 = arith.addf %44, %47 : vector<20x128xf32>
    %cst_40 = arith.constant 0.000000e+00 : f32
    %49 = vector.broadcast %cst_40 : f32 to vector<20x128xf32>
    %50 = arith.maximumf %48, %49 : vector<20x128xf32>
    %c5 = arith.constant 5 : index
    %c0_41 = arith.constant 0 : index
    %c0_42 = arith.constant 0 : index
    %51 = vector.load %arg4[%c5, %c0_41, %c0_42] : memref<7x20x20xf32, #tpu.memory_space<vmem>>, vector<1x20x20xf32>
    %52 = vector.shape_cast %51 : vector<1x20x20xf32> to vector<20x20xf32>
    %cst_43 = arith.constant dense<0.000000e+00> : vector<20x128xf32>
    %53 = tpu.matmul %52, %50, %cst_43 {dimension_numbers = #tpu.dot_dimension_numbers<[1], [0], [0], [1], [0, 0, 1, 1], [], []>} : vector<20x20xf32>, vector<20x128xf32>, vector<20x128xf32> -> vector<20x128xf32>
    %c5_44 = arith.constant 5 : index
    %c0_45 = arith.constant 0 : index
    %c0_46 = arith.constant 0 : index
    %54 = vector.load %arg5[%c5_44, %c0_45, %c0_46] : memref<7x20x1xf32, #tpu.memory_space<vmem>>, vector<1x20x1xf32>
    %55 = vector.shape_cast %54 : vector<1x20x1xf32> to vector<20x1xf32>
    %56 = vector.broadcast %55 : vector<20x1xf32> to vector<20x128xf32>
    %57 = arith.addf %53, %56 : vector<20x128xf32>
    %cst_47 = arith.constant 0.000000e+00 : f32
    %58 = vector.broadcast %cst_47 : f32 to vector<20x128xf32>
    %59 = arith.maximumf %57, %58 : vector<20x128xf32>
    %c6 = arith.constant 6 : index
    %c0_48 = arith.constant 0 : index
    %c0_49 = arith.constant 0 : index
    %60 = vector.load %arg4[%c6, %c0_48, %c0_49] : memref<7x20x20xf32, #tpu.memory_space<vmem>>, vector<1x20x20xf32>
    %61 = vector.shape_cast %60 : vector<1x20x20xf32> to vector<20x20xf32>
    %cst_50 = arith.constant dense<0.000000e+00> : vector<20x128xf32>
    %62 = tpu.matmul %61, %59, %cst_50 {dimension_numbers = #tpu.dot_dimension_numbers<[1], [0], [0], [1], [0, 0, 1, 1], [], []>} : vector<20x20xf32>, vector<20x128xf32>, vector<20x128xf32> -> vector<20x128xf32>
    %c6_51 = arith.constant 6 : index
    %c0_52 = arith.constant 0 : index
    %c0_53 = arith.constant 0 : index
    %63 = vector.load %arg5[%c6_51, %c0_52, %c0_53] : memref<7x20x1xf32, #tpu.memory_space<vmem>>, vector<1x20x1xf32>
    %64 = vector.shape_cast %63 : vector<1x20x1xf32> to vector<20x1xf32>
    %65 = vector.broadcast %64 : vector<20x1xf32> to vector<20x128xf32>
    %66 = arith.addf %62, %65 : vector<20x128xf32>
    %cst_54 = arith.constant 0.000000e+00 : f32
    %67 = vector.broadcast %cst_54 : f32 to vector<20x128xf32>
    %68 = arith.maximumf %66, %67 : vector<20x128xf32>
    %c0_55 = arith.constant 0 : index
    %c0_56 = arith.constant 0 : index
    %69 = vector.load %arg6[%c0_55, %c0_56] : memref<1x20xf32, #tpu.memory_space<vmem>>, vector<1x20xf32>
    %cst_57 = arith.constant dense<0.000000e+00> : vector<1x128xf32>
    %70 = tpu.matmul %69, %68, %cst_57 {dimension_numbers = #tpu.dot_dimension_numbers<[1], [0], [0], [1], [0, 0, 1, 1], [], []>} : vector<1x20xf32>, vector<20x128xf32>, vector<1x128xf32> -> vector<1x128xf32>
    %c0_58 = arith.constant 0 : index
    %c0_59 = arith.constant 0 : index
    %71 = vector.load %arg7[%c0_58, %c0_59] : memref<1x1xf32, #tpu.memory_space<vmem>>, vector<1x1xf32>
    %72 = vector.broadcast %71 : vector<1x1xf32> to vector<1x128xf32>
    %73 = arith.addf %70, %72 : vector<1x128xf32>
    %c0_60 = arith.constant 0 : index
    %c0_61 = arith.constant 0 : index
    %74 = vector.load %arg8[%c0_60, %c0_61] : memref<1x128xf32, #tpu.memory_space<vmem>>, vector<1x128xf32>
    tpu.vector_store %arg8[%c0_60, %c0_61], %73 {strides = array<i32>} : memref<1x128xf32, #tpu.memory_space<vmem>>, vector<1x128xf32>,
    return
  }
  func.func @transform_0(%arg0: i32) -> (i32, i32) {
    %c0_i32 = arith.constant 0 : i32
    %c0_i32_0 = arith.constant 0 : i32
    return %c0_i32, %arg0 : i32, i32
  }
  func.func @transform_1(%arg0: i32) -> (i32, i32) {
    %c0_i32 = arith.constant 0 : i32
    %c0_i32_0 = arith.constant 0 : i32
    %c0_i32_1 = arith.constant 0 : i32
    return %c0_i32, %c0_i32_0 : i32, i32
  }
  func.func @transform_2(%arg0: i32) -> (i32, i32) {
    %c0_i32 = arith.constant 0 : i32
    %c0_i32_0 = arith.constant 0 : i32
    %c0_i32_1 = arith.constant 0 : i32
    return %c0_i32, %c0_i32_0 : i32, i32
  }
  func.func @transform_3(%arg0: i32) -> (i32, i32, i32) {
    %c0_i32 = arith.constant 0 : i32
    %c0_i32_0 = arith.constant 0 : i32
    %c0_i32_1 = arith.constant 0 : i32
    %c0_i32_2 = arith.constant 0 : i32
    return %c0_i32, %c0_i32_0, %c0_i32_1 : i32, i32, i32
  }
  func.func @transform_4(%arg0: i32) -> (i32, i32, i32) {
    %c0_i32 = arith.constant 0 : i32
    %c0_i32_0 = arith.constant 0 : i32
    %c0_i32_1 = arith.constant 0 : i32
    %c0_i32_2 = arith.constant 0 : i32
    return %c0_i32, %c0_i32_0, %c0_i32_1 : i32, i32, i32
  }
  func.func @transform_5(%arg0: i32) -> (i32, i32) {
    %c0_i32 = arith.constant 0 : i32
    %c0_i32_0 = arith.constant 0 : i32
    %c0_i32_1 = arith.constant 0 : i32
    return %c0_i32, %c0_i32_0 : i32, i32
  }
  func.func @transform_6(%arg0: i32) -> (i32, i32) {
    %c0_i32 = arith.constant 0 : i32
    %c0_i32_0 = arith.constant 0 : i32
    %c0_i32_1 = arith.constant 0 : i32
    return %c0_i32, %c0_i32_0 : i32, i32
  }
  func.func @transform_7(%arg0: i32) -> (i32, i32) {
    %c0_i32 = arith.constant 0 : i32
    %c0_i32_0 = arith.constant 0 : i32
    return %c0_i32, %arg0 : i32, i32
  }
}

</mosaic_0001>

<bundles_post_ra>
// kernel: tpu_custom_call.1
= control target key start
LH: loop header
LB: loop body
LE: loop exit
PB: predicated region body
PF: predicated region fallthrough
CT: control target
= control target key end

     0   :  { %s1696_s0 = inlined_call_operand.vmem [shape: f32[10,128], index: 0, kind: input, shape index: {}]   ;;  %s1697_s1 = inlined_call_operand.vmem [shape: f32[20,10], index: 1, kind: input, shape index: {}]   ;;  %s1698_s2 = inlined_call_operand.vmem [shape: f32[20,1], index: 2, kind: input, shape index: {}]   ;;  %s1699_s3 = inlined_call_operand.vmem [shape: f32[7,20,20], index: 3, kind: input, shape index: {}]   ;;  %s1700_s4 = inlined_call_operand.vmem [shape: f32[7,20,1], index: 4, kind: input, shape index: {}]   ;;  %s1701_s5 = inlined_call_operand.vmem [shape: f32[1,20], index: 5, kind: input, shape index: {}]   ;;  %s1702_s6 = inlined_call_operand.<no memory space> [shape: f32[1,1], index: 6, kind: input, shape index: {}]   ;;  %s1703_s7 = inlined_call_operand.hbm [shape: f32[1,128], index: 7, kind: output, shape index: {}]  }
   0x1   :  { %v12_v0 = vstv %s1702_s6 }
   0x2   :  { %13 = vst [vmem:[#allocation2] sm:$0x1] %v12_v0 }
   0x3   :  { %v32_v1 = vld [vmem:[%s1696_s0] sm:$0xff]  ;;  %v33_v2 = vld [vmem:[%s1696_s0 + $0x8] sm:$0x3]  ;;  %vm62_vm0 = vcmask 1041408   ;;  %v1382_v3 = vmov 0.0|0.0   ;;  %vm1383_vm1 = vmmov 1  }
   0x4   :  { %1322 = vmatprep.subr.bf16.mxu0 %v1382_v3  ;;  %v1323_v4 = vpack.c.bf16 %v33_v2, %v32_v1  ;;  %vm1324_vm2 = vmpackc.low %vm62_vm0, %vm1383_vm1  ;;  %1326 = vmatprep.subr.bf16.mxu1 %v1382_v3  ;;  %vm1384_vm3 = vmmov 0   ;;  %v1385_v5 = vmov 0.0   ;;  %v34_v6 = vld [vmem:[%s1698_s2] sm:$0xff]  ;;  %vm52_vm4 = vcmask 80896   ;;  %v36_v9 = vld [vmem:[%s1698_s2 + $0x10] sm:$0xf] }
   0x5   :  { %1199 = vmatprep.mubr.msk.f32.mxu0 %vm1384_vm3, %v1385_v5  ;;  %1214 = vmatprep.mubr.msk.f32.mxu1 %vm1384_vm3, %v1385_v5  ;;  %v29_v7 = vld [vmem:[%s1697_s1] sm:$0xff]  ;;  %v1386_v8 = vmov 0   ;;  %v35_v10 = vld [vmem:[%s1698_s2 + $0x8] sm:$0xff]  ;;  %v151_v14 = vld [vmem:[%s1700_s4 + $0x10] sm:$0xf] }
   0x6   :  { %1325 = vmatpush3.bf16.msk.msra.mxu0 %vm1324_vm2, %v1323_v4  ;;  %1356 = vset.pattern.permute.xlu0 %v1386_v8  ;;  %v149_v11 = vld [vmem:[%s1700_s4] sm:$0xff]  ;;  %v30_v12 = vld [vmem:[%s1697_s1 + $0x8] sm:$0xff] }
   0x7   :  { %39 = vperm.xlu0 %1356, %v34_v6   ;;  %1357 = vset.pattern.permute.xlu1 %v1386_v8  ;;  %v150_v13 = vld [vmem:[%s1700_s4 + $0x8] sm:$0xff] }
   0x8   :  { %49 = vperm.xlu1 %1357, %v36_v9   ;;  %1329 = vmatprep.subr.bf16.mxu0 %v1382_v3 }
   0x9   :  { %1200 = vmatmul.mubr.msk.f32.vlgmr.msra.gmra.mrb[0].mxu0 %vm52_vm4, %v29_v7 }
   0xa   :  { %1202 = vmatprep.mubr.msk.f32.mxu0 %vm1384_vm3, %v1385_v5 }
   0xb   :  { %44 = vperm.xlu0 %1356, %v35_v10  }
   0xc   :  { %154 = vperm.xlu1 %1357, %v149_v11  }
   0xd   :  { %1203 = vmatmul.mubr.msk.f32.gmra.mrb[2].mxu0 %vm52_vm4, %v30_v12 }
   0xe   :  { %14 = vsyncpa [#allocation4], 0  ;;  %1205 = vmatprep.mubr.msk.f32.mxu0 %vm1384_vm3, %v1385_v5  ;;  %v31_v15 = vld [vmem:[%s1697_s1 + $0x10] sm:$0xf]  ;;  %v1085_v16 = vld [vmem:[%s1700_s4 + $0x18] sm:$0xff]  ;;  %vm177_vm5 = vcmask 1043456  }
   0xf   :  { %159 = vperm.xlu0 %1356, %v150_v13   ;;  %v1086_v17 = vld [vmem:[%s1700_s4 + $0x20] sm:$0xff]  ;;  %v1087_v18 = vld [vmem:[%s1700_s4 + $0x28] sm:$0xf]  ;;  %v1095_v19 = vld [vmem:[%s1700_s4 + $0x30] sm:$0xff]  ;;  %vm167_vm6 = vcmask 162816   ;;  %s1387_s2 = smov [#allocation3]  }
  0x10   :  { %164 = vperm.xlu1 %1357, %v151_v14   ;;  %v1096_v20 = vld [vmem:[%s1700_s4 + $0x38] sm:$0xff]  ;;  %v1097_v21 = vld [vmem:[%s1700_s4 + $0x40] sm:$0xf]  ;;  %v1105_v22 = vld [vmem:[%s1700_s4 + $0x48] sm:$0xff]  ;;  %s1066_s19 = sshll.u32 %s1387_s2, 4  ;;  %s1067_s19 = int_to_ptr.vmem [resolvable:$true] %s1066_s19 }
  0x11   :  { %1206 = vmatmul.mubr.msk.f32.gmra.mrb[4].mxu0 %vm52_vm4, %v31_v15  ;;  %v1106_v23 = vld [vmem:[%s1700_s4 + $0x50] sm:$0xff]  ;;  %v1107_v24 = vld [vmem:[%s1700_s4 + $0x58] sm:$0xf]  ;;  %v1115_v25 = vld [vmem:[%s1700_s4 + $0x60] sm:$0xff]  ;;  %s1358_s20 = scalar_lea.vmem %s1067_s19, 16  ;;  %s1362_s21 = scalar_lea.vmem %s1067_s19, 32 }
  0x12   :  { %1229 = vmatprep.mubr.msk.f32.mxu0 %vm1384_vm3, %v1385_v5  ;;  %v1116_v26 = vld [vmem:[%s1700_s4 + $0x68] sm:$0xff]  ;;  %v1117_v27 = vld [vmem:[%s1700_s4 + $0x70] sm:$0xf]  ;;  %v1125_v28 = vld [vmem:[%s1700_s4 + $0x78] sm:$0xff]  ;;  %p1359_p0 = scmp.ne.s32.totalorder %s1067_s19, %s1358_s20  ;;  %p1363_p1 = scmp.lt.s32.totalorder %s1067_s19, %s1067_s19 }
  0x13   :  { %274 = vperm.xlu0 %1356, %v1085_v16   ;;  %v1126_v29 = vld [vmem:[%s1700_s4 + $0x80] sm:$0xff]  ;;  %v1127_v30 = vld [vmem:[%s1700_s4 + $0x88] sm:$0xf]  ;;  %v1135_v31 = vld [vmem:[%s1700_s4 + $0x90] sm:$0xff]  ;;  %p1364_p2 = scmp.lt.s32.totalorder %s1362_s21, %s1358_s20 }
  0x14   :  { %279 = vperm.xlu1 %1357, %v1086_v17   ;;  %v1136_v32 = vld [vmem:[%s1700_s4 + $0x98] sm:$0xff]  ;;  %v1137_v33 = vld [vmem:[%s1700_s4 + $0xa0] sm:$0xf]  ;;  %v147_v49 = vld [vmem:[%s1699_s3 + $0x8] sm:$0xff] }
  0x15   :  { %v973_v34 = vld [vmem:[#allocation2] sm:$0x1]  ;;  %v148_v50 = vld [vmem:[%s1699_s3 + $0x10] sm:$0xf]  ;;  %v1082_v4 = vld [vmem:[%s1699_s3 + $0x18] sm:$0xff]  ;;  %p1365_p3 = por %p1364_p2, %p1363_p1 }
  0x16   :  { %v146_v48 = vld [vmem:[%s1699_s3] sm:$0xff]  ;;  %v1084_v7 = vld [vmem:[%s1699_s3 + $0x28] sm:$0xf] }
  0x17   :  { %284 = vperm.xlu0 %1356, %v1087_v18   ;;  %v1083_v6 = vld [vmem:[%s1699_s3 + $0x20] sm:$0xff]  ;;  %p1366_p4 = pnand %p1365_p3, %p1359_p0 }
  0x18   :  { %392 = vperm.xlu1 %1357, %v1095_v19  }
  0x1b   :  { %397 = vperm.xlu0 %1356, %v1096_v20  }
  0x1c   :  { %402 = vperm.xlu1 %1357, %v1097_v21  }
  0x1f   :  { %510 = vperm.xlu0 %1356, %v1105_v22  }
  0x20   :  { %515 = vperm.xlu1 %1357, %v1106_v23  }
  0x23   :  { %520 = vperm.xlu0 %1356, %v1107_v24   ;;  %v1092_v24 = vld [vmem:[%s1699_s3 + $0x30] sm:$0xff] }
  0x24   :  { %628 = vperm.xlu1 %1357, %v1115_v25   ;;  %v1093_v25 = vld [vmem:[%s1699_s3 + $0x38] sm:$0xff] }
  0x27   :  { %633 = vperm.xlu0 %1356, %v1116_v26   ;;  %v1094_v26 = vld [vmem:[%s1699_s3 + $0x40] sm:$0xf] }
  0x28   :  { %638 = vperm.xlu1 %1357, %v1117_v27  }
  0x2b   :  { %746 = vperm.xlu0 %1356, %v1125_v28  }
  0x2c   :  { %751 = vperm.xlu1 %1357, %v1126_v29  }
  0x2f   :  { %756 = vperm.xlu0 %1356, %v1127_v30  }
  0x30   :  { %864 = vperm.xlu1 %1357, %v1135_v31  }
  0x33   :  { %869 = vperm.xlu0 %1356, %v1136_v32  }
  0x34   :  { %874 = vperm.xlu1 %1357, %v1137_v33  }
  0x37   :  { %976 = vperm.xlu0 %1356, %v973_v34  }
  0x86   :  { %v40_v35 = vpop.permute.xlu0 %39 }
  0x87   :  { %v50_v44 = vpop.permute.xlu1 %49 }
  0x8a   :  { %v45_v38 = vpop.permute.xlu0 %44 }
  0x8b   :  { %v155_v53 = vpop.permute.xlu1 %154 }
  0x8e   :  { %v160_v55 = vpop.permute.xlu0 %159 }
  0x8f   :  { %v165_v61 = vpop.permute.xlu1 %164 }
  0x92   :  { %v275_v10 = vpop.permute.xlu0 %274 }
  0x93   :  { %v280_v12 = vpop.permute.xlu1 %279 }
  0x96   :  { %v285_v18 = vpop.permute.xlu0 %284 }
  0x97   :  { %v393_v29 = vpop.permute.xlu1 %392 }
  0x9a   :  { %v398_v31 = vpop.permute.xlu0 %397 }
  0xdc   :  { %v132_v36 = vpop.f32.mrb[0].mxu0 }
  0xdd   :  { %v1201_v37 = vpop.f32.mrb[1].mxu0  ;;  %v133_v40 = vadd.f32 %v132_v36, %v40_v35 }
  0xde   :  { %v403_v37 = vpop.permute.xlu1 %402 }
  0xe0   :  { %v137_v39 = vpop.f32.mrb[2].mxu0 }
  0xe1   :  { %v138_v41 = vadd.f32 %v137_v39, %v45_v38  ;;  %v1204_v42 = vpop.f32.mrb[3].mxu0 }
  0xe3   :  { %v1327_v43 = vpack.c.bf16 %v138_v41, %v133_v40 }
  0xe4   :  { %v142_v45 = vpop.f32.mrb[4].mxu0 }
  0xe5   :  { %v143_v46 = vadd.f32 %v142_v45, %v50_v44  ;;  %1328 = vmatpush3.bf16.msra.mxu1 %v1327_v43  ;;  %v1207_v47 = vpop.f32.mrb[5].mxu0  ;;  %v1102_v43 = vld [vmem:[%s1699_s3 + $0x48] sm:$0xff]  ;;  %v1103_v44 = vld [vmem:[%s1699_s3 + $0x50] sm:$0xff]  ;;  %v1104_v45 = vld [vmem:[%s1699_s3 + $0x58] sm:$0xf] }
  0xe6   :  { %1212 = vmatprep.subr.mxu1 %v1385_v5 }
  0xe9   :  { %1213 = vmatpush3.msk.msra.mxu1 %vm177_vm5, %v143_v46 }
  0xea   :  { %1215 = vmatmul.mubr.msk.f32.vlgmr.msra.gmra.mrb[0].mxu1 %vm167_vm6, %v146_v48  ;;  %1332 = vmatprep.subr.bf16.mxu1 %v1382_v3  ;;  %v511_v48 = vpop.permute.xlu0 %510 }
  0xeb   :  { %1217 = vmatprep.mubr.msk.f32.mxu1 %vm1384_vm3, %v1385_v5 }
  0xee   :  { %1218 = vmatmul.mubr.msk.f32.gmra.mrb[2].mxu1 %vm167_vm6, %v147_v49 }
  0xef   :  { %1220 = vmatprep.mubr.msk.f32.mxu1 %vm1384_vm3, %v1385_v5 }
  0xf2   :  { %1221 = vmatmul.mubr.msk.f32.gmra.mrb[4].mxu1 %vm167_vm6, %v148_v50  ;;  %v516_v50 = vpop.permute.xlu1 %515 }
  0xf3   :  { %1244 = vmatprep.mubr.msk.f32.mxu1 %vm1384_vm3, %v1385_v5 }
 0x1bd   :  { %v247_v51 = vpop.f32.mrb[0].mxu1 }
 0x1be   :  { %v1216_v52 = vpop.f32.mrb[1].mxu1  ;;  %v248_v54 = vadd.f32 %v247_v51, %v155_v53 }
 0x1c0   :  { %v261_v59 = vmax.f32 %v248_v54, 0.0 }
 0x1c1   :  { %v252_v56 = vpop.f32.mrb[2].mxu1 }
 0x1c2   :  { %v253_v57 = vadd.f32 %v252_v56, %v160_v55  ;;  %v1219_v58 = vpop.f32.mrb[3].mxu1  ;;  %v521_v56 = vpop.permute.xlu0 %520 }
 0x1c4   :  { %v262_v60 = vmax.f32 %v253_v57, 0.0 }
 0x1c5   :  { %v257_v62 = vpop.f32.mrb[4].mxu1 }
 0x1c6   :  { %v1330_v63 = vpack.c.bf16 %v262_v60, %v261_v59  ;;  %v258_v0 = vadd.f32 %v257_v62, %v165_v61  ;;  %v1222_v1 = vpop.f32.mrb[5].mxu1  ;;  %v1112_v62 = vld [vmem:[%s1699_s3 + $0x60] sm:$0xff] }
 0x1c8   :  { %1331 = vmatpush3.bf16.msra.mxu0 %v1330_v63  ;;  %v263_v2 = vmax.f32 %v258_v0, 0.0  ;;  %v1113_v63 = vld [vmem:[%s1699_s3 + $0x68] sm:$0xff]  ;;  %v1114_v0 = vld [vmem:[%s1699_s3 + $0x70] sm:$0xf] }
 0x1c9   :  { %1227 = vmatprep.subr.mxu0 %v1385_v5 }
 0x1cc   :  { %1228 = vmatpush3.msk.msra.mxu0 %vm177_vm5, %v263_v2 }
 0x1cd   :  { %1230 = vmatmul.mubr.msk.f32.vlgmr.msra.gmra.mrb[6].mxu0 %vm167_vm6, %v1082_v4  ;;  %1335 = vmatprep.subr.bf16.mxu0 %v1382_v3  ;;  %v629_v4 = vpop.permute.xlu1 %628 }
 0x1ce   :  { %1232 = vmatprep.mubr.msk.f32.mxu0 %vm1384_vm3, %v1385_v5 }
 0x1d1   :  { %1233 = vmatmul.mubr.msk.f32.gmra.mrb[8].mxu0 %vm167_vm6, %v1083_v6 }
 0x1d2   :  { %1235 = vmatprep.mubr.msk.f32.mxu0 %vm1384_vm3, %v1385_v5 }
 0x1d5   :  { %1236 = vmatmul.mubr.msk.f32.gmra.mrb[10].mxu0 %vm167_vm6, %v1084_v7  ;;  %v634_v7 = vpop.permute.xlu0 %633 }
 0x1d6   :  { %1259 = vmatprep.mubr.msk.f32.mxu0 %vm1384_vm3, %v1385_v5 }
 0x2a0   :  { %v365_v8 = vpop.f32.mrb[6].mxu0 }
 0x2a1   :  { %v1231_v9 = vpop.f32.mrb[7].mxu0  ;;  %v366_v11 = vadd.f32 %v365_v8, %v275_v10 }
 0x2a3   :  { %v379_v16 = vmax.f32 %v366_v11, 0.0 }
 0x2a4   :  { %v370_v13 = vpop.f32.mrb[8].mxu0 }
 0x2a5   :  { %v371_v14 = vadd.f32 %v370_v13, %v280_v12  ;;  %v1234_v15 = vpop.f32.mrb[9].mxu0  ;;  %v639_v13 = vpop.permute.xlu1 %638 }
 0x2a7   :  { %v380_v17 = vmax.f32 %v371_v14, 0.0 }
 0x2a8   :  { %v375_v19 = vpop.f32.mrb[10].mxu0 }
 0x2a9   :  { %v1333_v20 = vpack.c.bf16 %v380_v17, %v379_v16  ;;  %v376_v21 = vadd.f32 %v375_v19, %v285_v18  ;;  %v1237_v22 = vpop.f32.mrb[11].mxu0  ;;  %v1122_v19 = vld [vmem:[%s1699_s3 + $0x78] sm:$0xff] }
 0x2ab   :  { %1334 = vmatpush3.bf16.msra.mxu1 %v1333_v20  ;;  %v381_v23 = vmax.f32 %v376_v21, 0.0  ;;  %v1123_v20 = vld [vmem:[%s1699_s3 + $0x80] sm:$0xff]  ;;  %v1124_v21 = vld [vmem:[%s1699_s3 + $0x88] sm:$0xf] }
 0x2ac   :  { %1242 = vmatprep.subr.mxu1 %v1385_v5 }
 0x2af   :  { %1243 = vmatpush3.msk.msra.mxu1 %vm177_vm5, %v381_v23  ;;  %v747_v23 = vpop.permute.xlu0 %746 }
 0x2b0   :  { %1245 = vmatmul.mubr.msk.f32.vlgmr.msra.gmra.mrb[6].mxu1 %vm167_vm6, %v1092_v24  ;;  %1338 = vmatprep.subr.bf16.mxu1 %v1382_v3 }
 0x2b1   :  { %1247 = vmatprep.mubr.msk.f32.mxu1 %vm1384_vm3, %v1385_v5 }
 0x2b4   :  { %1248 = vmatmul.mubr.msk.f32.gmra.mrb[8].mxu1 %vm167_vm6, %v1093_v25  ;;  %v752_v25 = vpop.permute.xlu1 %751 }
 0x2b5   :  { %1250 = vmatprep.mubr.msk.f32.mxu1 %vm1384_vm3, %v1385_v5 }
 0x2b8   :  { %1251 = vmatmul.mubr.msk.f32.gmra.mrb[10].mxu1 %vm167_vm6, %v1094_v26 }
 0x2b9   :  { %1274 = vmatprep.mubr.msk.f32.mxu1 %vm1384_vm3, %v1385_v5 }
 0x383   :  { %v483_v27 = vpop.f32.mrb[6].mxu1 }
 0x384   :  { %v1246_v28 = vpop.f32.mrb[7].mxu1  ;;  %v484_v30 = vadd.f32 %v483_v27, %v393_v29 }
 0x386   :  { %v497_v35 = vmax.f32 %v484_v30, 0.0 }
 0x387   :  { %v488_v32 = vpop.f32.mrb[8].mxu1 }
 0x388   :  { %v489_v33 = vadd.f32 %v488_v32, %v398_v31  ;;  %v1249_v34 = vpop.f32.mrb[9].mxu1  ;;  %v757_v31 = vpop.permute.xlu0 %756 }
 0x38a   :  { %v498_v36 = vmax.f32 %v489_v33, 0.0 }
 0x38b   :  { %v493_v38 = vpop.f32.mrb[10].mxu1 }
 0x38c   :  { %v1336_v39 = vpack.c.bf16 %v498_v36, %v497_v35  ;;  %v494_v40 = vadd.f32 %v493_v38, %v403_v37  ;;  %v1252_v41 = vpop.f32.mrb[11].mxu1  ;;  %v1132_v37 = vld [vmem:[%s1699_s3 + $0x90] sm:$0xff]  ;;  %v1133_v38 = vld [vmem:[%s1699_s3 + $0x98] sm:$0xff] }
 0x38e   :  { %1337 = vmatpush3.bf16.msra.mxu0 %v1336_v39  ;;  %v499_v42 = vmax.f32 %v494_v40, 0.0  ;;  %v1134_v39 = vld [vmem:[%s1699_s3 + $0xa0] sm:$0xf] }
 0x38f   :  { %1257 = vmatprep.subr.mxu0 %v1385_v5 }
 0x392   :  { %1258 = vmatpush3.msk.msra.mxu0 %vm177_vm5, %v499_v42  ;;  %v865_v42 = vpop.permute.xlu1 %864 }
 0x393   :  { %1260 = vmatmul.mubr.msk.f32.vlgmr.msra.gmra.mrb[12].mxu0 %vm167_vm6, %v1102_v43  ;;  %1341 = vmatprep.subr.bf16.mxu0 %v1382_v3 }
 0x394   :  { %1262 = vmatprep.mubr.msk.f32.mxu0 %vm1384_vm3, %v1385_v5 }
 0x397   :  { %1263 = vmatmul.mubr.msk.f32.gmra.mrb[14].mxu0 %vm167_vm6, %v1103_v44  ;;  %v870_v44 = vpop.permute.xlu0 %869 }
 0x398   :  { %1265 = vmatprep.mubr.msk.f32.mxu0 %vm1384_vm3, %v1385_v5 }
 0x39b   :  { %1266 = vmatmul.mubr.msk.f32.gmra.mrb[16].mxu0 %vm167_vm6, %v1104_v45 }
 0x39c   :  { %1289 = vmatprep.mubr.msk.f32.mxu0 %vm1384_vm3, %v1385_v5 }
 0x466   :  { %v601_v46 = vpop.f32.mrb[12].mxu0 }
 0x467   :  { %v1261_v47 = vpop.f32.mrb[13].mxu0  ;;  %v602_v49 = vadd.f32 %v601_v46, %v511_v48 }
 0x469   :  { %v615_v54 = vmax.f32 %v602_v49, 0.0 }
 0x46a   :  { %v606_v51 = vpop.f32.mrb[14].mxu0 }
 0x46b   :  { %v607_v52 = vadd.f32 %v606_v51, %v516_v50  ;;  %v1264_v53 = vpop.f32.mrb[15].mxu0  ;;  %v875_v50 = vpop.permute.xlu1 %874 }
 0x46d   :  { %v616_v55 = vmax.f32 %v607_v52, 0.0 }
 0x46e   :  { %v611_v57 = vpop.f32.mrb[16].mxu0 }
 0x46f   :  { %v1339_v58 = vpack.c.bf16 %v616_v55, %v615_v54  ;;  %v612_v59 = vadd.f32 %v611_v57, %v521_v56  ;;  %v1267_v60 = vpop.f32.mrb[17].mxu0  ;;  %v972_v56 = vld [vmem:[%s1701_s5] sm:$0x1]  ;;  %v979_v57 = vlaneseq }
 0x470   :  { %v977_v60 = vpop.permute.xlu0 %976 }
 0x471   :  { %1340 = vmatpush3.bf16.msra.mxu1 %v1339_v58  ;;  %v617_v61 = vmax.f32 %v612_v59, 0.0  ;;  %v980_v58 = vshrl.u32 %v979_v57, 7 }
 0x472   :  { %1272 = vmatprep.subr.mxu1 %v1385_v5 }
 0x473   :  { %v981_v59 = vsub.s32 0, %v980_v58 }
 0x475   :  { %1273 = vmatpush3.msk.msra.mxu1 %vm177_vm5, %v617_v61  ;;  %v982_v61 = vrot.slane %v977_v60, %v981_v59 }
 0x476   :  { %1275 = vmatmul.mubr.msk.f32.vlgmr.msra.gmra.mrb[12].mxu1 %vm167_vm6, %v1112_v62  ;;  %1344 = vmatprep.subr.bf16.mxu1 %v1382_v3 }
 0x477   :  { %1277 = vmatprep.mubr.msk.f32.mxu1 %vm1384_vm3, %v1385_v5 }
 0x47a   :  { %1278 = vmatmul.mubr.msk.f32.gmra.mrb[14].mxu1 %vm167_vm6, %v1113_v63 }
 0x47b   :  { %1280 = vmatprep.mubr.msk.f32.mxu1 %vm1384_vm3, %v1385_v5 }
 0x47e   :  { %1281 = vmatmul.mubr.msk.f32.gmra.mrb[16].mxu1 %vm167_vm6, %v1114_v0 }
 0x47f   :  { %1304 = vmatprep.mubr.msk.f32.mxu1 %vm1384_vm3, %v1385_v5 }
 0x549   :  { %v719_v1 = vpop.f32.mrb[12].mxu1 }
 0x54a   :  { %v1276_v2 = vpop.f32.mrb[13].mxu1  ;;  %v720_v6 = vadd.f32 %v719_v1, %v629_v4 }
 0x54c   :  { %v733_v11 = vmax.f32 %v720_v6, 0.0 }
 0x54d   :  { %v724_v8 = vpop.f32.mrb[14].mxu1 }
 0x54e   :  { %v725_v9 = vadd.f32 %v724_v8, %v634_v7  ;;  %v1279_v10 = vpop.f32.mrb[15].mxu1 }
 0x550   :  { %v734_v12 = vmax.f32 %v725_v9, 0.0 }
 0x551   :  { %v729_v14 = vpop.f32.mrb[16].mxu1 }
 0x552   :  { %v1342_v15 = vpack.c.bf16 %v734_v12, %v733_v11  ;;  %v730_v16 = vadd.f32 %v729_v14, %v639_v13  ;;  %v1282_v17 = vpop.f32.mrb[17].mxu1 }
 0x554   :  { %1343 = vmatpush3.bf16.msra.mxu0 %v1342_v15  ;;  %v735_v18 = vmax.f32 %v730_v16, 0.0 }
 0x555   :  { %1287 = vmatprep.subr.mxu0 %v1385_v5 }
 0x558   :  { %1288 = vmatpush3.msk.msra.mxu0 %vm177_vm5, %v735_v18 }
 0x559   :  { %1290 = vmatmul.mubr.msk.f32.vlgmr.msra.gmra.mrb[18].mxu0 %vm167_vm6, %v1122_v19  ;;  %1347 = vmatprep.subr.bf16.mxu0 %v1382_v3 }
 0x55a   :  { %1292 = vmatprep.mubr.msk.f32.mxu0 %vm1384_vm3, %v1385_v5 }
 0x55d   :  { %1293 = vmatmul.mubr.msk.f32.gmra.mrb[20].mxu0 %vm167_vm6, %v1123_v20 }
 0x55e   :  { %1295 = vmatprep.mubr.msk.f32.mxu0 %vm1384_vm3, %v1385_v5 }
 0x561   :  { %1296 = vmatmul.mubr.msk.f32.gmra.mrb[22].mxu0 %vm167_vm6, %v1124_v21 }
 0x562   :  { %1319 = vmatprep.mubr.msk.f32.mxu0 %vm1384_vm3, %v1385_v5 }
 0x62c   :  { %v837_v3 = vpop.f32.mrb[18].mxu0 }
 0x62d   :  { %v1291_v22 = vpop.f32.mrb[19].mxu0  ;;  %v838_v24 = vadd.f32 %v837_v3, %v747_v23 }
 0x62f   :  { %v851_v29 = vmax.f32 %v838_v24, 0.0 }
 0x630   :  { %v842_v26 = vpop.f32.mrb[20].mxu0 }
 0x631   :  { %v843_v27 = vadd.f32 %v842_v26, %v752_v25  ;;  %v1294_v28 = vpop.f32.mrb[21].mxu0 }
 0x633   :  { %v852_v30 = vmax.f32 %v843_v27, 0.0 }
 0x634   :  { %v847_v32 = vpop.f32.mrb[22].mxu0 }
 0x635   :  { %v1345_v33 = vpack.c.bf16 %v852_v30, %v851_v29  ;;  %v848_v34 = vadd.f32 %v847_v32, %v757_v31  ;;  %v1297_v35 = vpop.f32.mrb[23].mxu0 }
 0x637   :  { %1346 = vmatpush3.bf16.msra.mxu1 %v1345_v33  ;;  %v853_v36 = vmax.f32 %v848_v34, 0.0 }
 0x638   :  { %1302 = vmatprep.subr.mxu1 %v1385_v5 }
 0x63b   :  { %1303 = vmatpush3.msk.msra.mxu1 %vm177_vm5, %v853_v36 }
 0x63c   :  { %1305 = vmatmul.mubr.msk.f32.vlgmr.msra.gmra.mrb[18].mxu1 %vm167_vm6, %v1132_v37 }
 0x63d   :  { %1307 = vmatprep.mubr.msk.f32.mxu1 %vm1384_vm3, %v1385_v5 }
 0x640   :  { %1308 = vmatmul.mubr.msk.f32.gmra.mrb[20].mxu1 %vm167_vm6, %v1133_v38 }
 0x641   :  { %1310 = vmatprep.mubr.msk.f32.mxu1 %vm1384_vm3, %v1385_v5 }
 0x644   :  { %1311 = vmatmul.mubr.msk.f32.gmra.mrb[22].mxu1 %vm167_vm6, %v1134_v39 }
 0x70f   :  { %v955_v40 = vpop.f32.mrb[18].mxu1 }
 0x710   :  { %v1306_v41 = vpop.f32.mrb[19].mxu1  ;;  %v956_v43 = vadd.f32 %v955_v40, %v865_v42 }
 0x712   :  { %v969_v48 = vmax.f32 %v956_v43, 0.0 }
 0x713   :  { %v960_v45 = vpop.f32.mrb[20].mxu1 }
 0x714   :  { %v961_v46 = vadd.f32 %v960_v45, %v870_v44  ;;  %v1309_v47 = vpop.f32.mrb[21].mxu1 }
 0x716   :  { %v970_v49 = vmax.f32 %v961_v46, 0.0 }
 0x717   :  { %v965_v51 = vpop.f32.mrb[22].mxu1 }
 0x718   :  { %v1348_v52 = vpack.c.bf16 %v970_v49, %v969_v48  ;;  %v966_v53 = vadd.f32 %v965_v51, %v875_v50  ;;  %v1312_v54 = vpop.f32.mrb[23].mxu1 }
 0x71a   :  { %1349 = vmatpush3.bf16.msra.mxu0 %v1348_v52  ;;  %v971_v55 = vmax.f32 %v966_v53, 0.0 }
 0x71b   :  { %1317 = vmatprep.subr.mxu0 %v1385_v5 }
 0x71e   :  { %1318 = vmatpush3.msk.msra.mxu0 %vm177_vm5, %v971_v55 }
 0x71f   :  { %1320 = vmatmul.mubr.msk.f32.vlgmr.msra.gmra.mrb[24].mxu0 %vm167_vm6, %v972_v56 }
 0x7f2   :  { %v1055_v62 = vpop.f32.mrb[24].mxu0 }
 0x7f3   :  { %v1056_v63 = vadd.f32 %v1055_v62, %v982_v61  ;;  %v1321_v0 = vpop.f32.mrb[25].mxu0 }
 0x7f5   :  { %1059 = vst [vmem:[#allocation3] sm:$0x1] %v1056_v63 }
 0x7f6   :  { %1369 = shalt.err (!%p1366_p4)
}
 0x7f7   :  { %s1370_s23 = scalar_lea.hbm %s1703_s7, 16 }
 0x7f8   :  { %p1371_p5 = scmp.ne.s32.totalorder %s1703_s7, %s1370_s23  ;;  %p1374_p6 = scmp.lt.u32.totalorder %s1370_s23, %s1703_s7 }
 0x7fa   :  { %p1376_p7 = pnand %p1374_p6, %p1371_p5 }
 0x7fc   :  { %1379 = shalt.err (!%p1376_p7)
}
 0x7fd   :  { %1069 = dma.vmem_to_hbm [thread:$0]  %s1067_s19, 16, %s1703_s7, [#allocation4]  }
 0x7fe   :  { %1380 = dma.done.wait [#allocation4], 16  }
 0x7ff   :  { %1381 = vsyncadd [#allocation4], 4294967280 }
 0x800   :  { %1073 = vsyncpa [#allocation4], 1 }

</bundles_post_ra>
